<compile_context>
chip_gen: v7x
topology: tpu7x:2x2x1
jax: 0.10.0
libtpu: 0.0.40
codegen_flags: <defaults>
</compile_context>

<pallas_src>
import functools

import numpy as np

import jax
import jax.numpy as jnp
from jax import lax
from jax.experimental import pallas as pl
from jax.experimental.pallas import tpu as pltpu

_LANE = 128
_SUB = 8
_INF_BITS = 0x7F800000           # bit pattern of +inf; all finite losses are below
_K1 = 8                          # coarse edges fused into kernel 1 (kept VALU-free)
_K2 = 8                          # edges per refinement counting pass
_VMEM_LIMIT = 32 * 1024 * 1024   # explicit scoped-VMEM budget, safe on v5e/v6e/v7x


def _bits_to_float(b):
    """Python int bit pattern -> Python float (f32 reinterpret)."""
    return float(np.array([b], dtype=np.int32).view(np.float32)[0])


# Fixed coarse edges, uniform in (non-negative) f32 bit-pattern space.  BCE
# losses are >= 0, so bit-pattern order == value order.
_EDGE1_BITS = tuple((_INF_BITS // (_K1 + 1)) * (j + 1) for j in range(_K1))
_EDGE1_VALS = tuple(_bits_to_float(b) for b in _EDGE1_BITS)


def _num_refine_passes():
    """Static upper bound on counting passes needed to shrink the worst-case
    post-fused bracket down to a single bit pattern."""
    cuts = [-1] + list(_EDGE1_BITS) + [_INF_BITS]
    w = max(b - a for a, b in zip(cuts[:-1], cuts[1:]))
    n = 0
    while w > 1:
        step = max(1, w // (_K2 + 1))
        w = max(step, w - _K2 * step)
        n += 1
    return n + 1  # one spare pass; extra passes are provably harmless


_N_REFINE = _num_refine_passes()


def _pick_tile(rows, cap):
    """Largest multiple-of-8 divisor of `rows` that is <= cap."""
    t_max = min(cap, rows)
    t_max -= t_max % _SUB
    for t in range(t_max, _SUB - 1, -_SUB):
        if rows % t == 0:
            return t
    return _SUB


# ----------------------------------------------------------------------------
# Kernel 1: BCE-with-logits loss + fused coarse rank counts.
# ----------------------------------------------------------------------------
def _bce_kernel(logits_ref, target_ref, loss_ref, cnt_ref, *,
                coarse_edges, valid_per_row, padded):
    k = pl.program_id(1)

    @pl.when(k == 0)
    def _():
        cnt_ref[...] = jnp.zeros_like(cnt_ref)

    # BCEWithLogitsLoss(reduction='none'): max(x,0) - x*y + log(1 + exp(-|x|))
    x = logits_ref[...].astype(jnp.float32)
    y = target_ref[...].astype(jnp.float32)
    loss = jnp.maximum(x, 0.0) - x * y + jnp.log1p(jnp.exp(-jnp.abs(x)))

    tile_rows = loss.shape[1]
    if padded:
        # Padding (ragged fallback only) is marked -inf so it can never pass a
        # '>' test: excluded from the counts, the threshold and the OHEM mask.
        row = lax.broadcasted_iota(jnp.int32, loss.shape, 1) + k * tile_rows
        lane = lax.broadcasted_iota(jnp.int32, loss.shape, 2)
        loss = jnp.where(row * _LANE + lane < valid_per_row, loss, -jnp.inf)

    loss_out = loss.astype(loss_ref.dtype)
    loss_ref[...] = loss_out

    # Fused coarse counts: accumulate per (batch, edge) into vreg-shaped
    # (8, 128) cells (VALU only, no XLU); exact integer reduce happens in the
    # wrapper in int32.  Counting the *stored* dtype keeps the selection
    # consistent when losses_dtype == bfloat16.
    l3 = loss_out.astype(jnp.float32).reshape(tile_rows // _SUB, _SUB, _LANE)
    for j, e in enumerate(coarse_edges):
        cnt_ref[0, j] += jnp.sum(jnp.where(l3 > e, 1.0, 0.0), axis=0)


# ----------------------------------------------------------------------------
# Refinement kernel: count_gt at K2 edges (edges arrive via scalar prefetch).
# ----------------------------------------------------------------------------
def _count_gt_kernel(edges_ref, loss_ref, cnt_ref, *, n_edges):
    first = (pl.program_id(0) == 0) & (pl.program_id(1) == 0)

    @pl.when(first)
    def _():
        cnt_ref[...] = jnp.zeros_like(cnt_ref)

    l = loss_ref[...].astype(jnp.float32)                 # (1, tr, 128)
    l3 = l.reshape(l.shape[1] // _SUB, _SUB, _LANE)
    for j in range(n_edges):
        e = edges_ref[j]
        cnt_ref[j] += jnp.sum(jnp.where(l3 > e, 1.0, 0.0), axis=0)


# ----------------------------------------------------------------------------
# Kernel 2: per-batch OHEM masked sum / count.
# ----------------------------------------------------------------------------
def _ohem_reduce_kernel(thr_ref, loss_ref, sum_ref, cnt_ref, *, reduce_mean):
    k = pl.program_id(1)

    @pl.when(k == 0)
    def _():
        sum_ref[...] = jnp.zeros_like(sum_ref)
        cnt_ref[...] = jnp.zeros_like(cnt_ref)

    t = thr_ref[0]
    l = loss_ref[...].astype(jnp.float32)                 # (1, tr, 128)
    l3 = l.reshape(l.shape[1] // _SUB, _SUB, _LANE)
    keep = l3 > t
    sum_ref[0] += jnp.sum(jnp.where(keep, l3, 0.0), axis=0)
    if reduce_mean:
        cnt_ref[0] += jnp.sum(jnp.where(keep, 1.0, 0.0), axis=0)
    # TODO(synk): on v7x with B == 1 (or odd), split the nt axis across the two
    # TensorCores (leading parallel axis of 2 + wrapper-side merge).


@functools.partial(jax.jit, static_argnames=("max_kept", "losses_dtype"))
def limited_loss_ohem_cross_entropy(logits, target, max_kept=0.001,
                                    losses_dtype=jnp.float32):
    """Forward pass of LimitedLossOhemCrossEntropy. Returns per-batch losses (B,)."""
    B = logits.shape[0]
    P = 1
    for d in logits.shape[1:]:
        P *= d
    numel = B * P
    idx = min(int(max_kept * numel), numel - 1)
    reduce_mean = P > 1

    # ---- layout: lane-dense (B, pr, 128), pad-free whenever P % 1024 == 0 ----
    if P % (_SUB * _LANE) == 0:
        p_pad, padded = P, False
    else:
        # TODO(synk): for ragged sizes, handle the (<1024 elem/row) tail in plain
        # jnp instead of materializing padded copies of logits AND target.
        p_pad, padded = -(-P // (_SUB * _LANE)) * (_SUB * _LANE), True

    lg = logits.reshape(B, P)
    tg = target.reshape(B, P)
    if padded:
        lg = jnp.pad(lg, ((0, 0), (0, p_pad - P)))
        tg = jnp.pad(tg, ((0, 0), (0, p_pad - P)))
    pr = p_pad // _LANE
    lg = lg.reshape(B, pr, _LANE)
    tg = tg.reshape(B, pr, _LANE)

    tr1 = _pick_tile(pr, 4096)   # kernel 1: 3 f32 streams (~12 MB double-buffered max)
    tr2 = _pick_tile(pr, 8192)   # single-stream reduction / counting kernels
    nt1 = pr // tr1
    nt2 = pr // tr2
    loss_bytes = jnp.dtype(losses_dtype).itemsize

    # ---- Kernel 1: BCE loss + fused coarse counts ----------------------------
    bce = pl.pallas_call(
        functools.partial(_bce_kernel, coarse_edges=_EDGE1_VALS,
                          valid_per_row=P, padded=padded),
        out_shape=(jax.ShapeDtypeStruct((B, pr, _LANE), losses_dtype),
                   jax.ShapeDtypeStruct((B, _K1, _SUB, _LANE), jnp.float32)),
        grid_spec=pltpu.PrefetchScalarGridSpec(
            num_scalar_prefetch=0,
            grid=(B, nt1),
            in_specs=[pl.BlockSpec((1, tr1, _LANE), lambda b, k: (b, k, 0)),
                      pl.BlockSpec((1, tr1, _LANE), lambda b, k: (b, k, 0))],
            out_specs=[pl.BlockSpec((1, tr1, _LANE), lambda b, k: (b, k, 0)),
                       pl.BlockSpec((1, _K1, _SUB, _LANE),
                                    lambda b, k: (b, 0, 0, 0))],
        ),
        compiler_params=pltpu.CompilerParams(
            dimension_semantics=("parallel", "arbitrary"),
            vmem_limit_bytes=_VMEM_LIMIT),
        cost_estimate=pl.CostEstimate(
            flops=(8 + 3 * _K1) * B * p_pad,
            transcendentals=2 * B * p_pad,
            bytes_accessed=(8 + loss_bytes) * B * p_pad),
    )
    losses, cnt1 = bce(lg, tg)

    # ---- Threshold selection: exact bit-pattern bracketing --------------------
    # Invariant: the (idx+1)-th largest loss lies in (value(lo), value(hi)],
    # maintained purely from exact integer counts of (loss > edge).
    counts1 = cnt1.astype(jnp.int32).sum(axis=(0, 2, 3))            # (K1,) exact
    e1b = jnp.asarray(_EDGE1_BITS, jnp.int32)
    hi0 = jnp.min(jnp.where(counts1 <= idx, e1b, jnp.int32(_INF_BITS)))
    lo0 = jnp.max(jnp.where(counts1 >= idx + 1, e1b, jnp.int32(-1)))

    count_call = pl.pallas_call(
        functools.partial(_count_gt_kernel, n_edges=_K2),
        out_shape=jax.ShapeDtypeStruct((_K2, _SUB, _LANE), jnp.float32),
        grid_spec=pltpu.PrefetchScalarGridSpec(
            num_scalar_prefetch=1,
            grid=(B, nt2),
            in_specs=[pl.BlockSpec((1, tr2, _LANE), lambda b, k, e: (b, k, 0))],
            out_specs=pl.BlockSpec((_K2, _SUB, _LANE), lambda b, k, e: (0, 0, 0)),
        ),
        compiler_params=pltpu.CompilerParams(
            dimension_semantics=("arbitrary", "arbitrary"),
            vmem_limit_bytes=_VMEM_LIMIT),
        cost_estimate=pl.CostEstimate(
            flops=3 * _K2 * B * p_pad, transcendentals=0,
            bytes_accessed=loss_bytes * B * p_pad),
    )

    arange_k2 = jnp.arange(1, _K2 + 1, dtype=jnp.int32)

    def _refine(_, carry):
        lo, hi = carry
        step = jnp.maximum(jnp.int32(1), (hi - lo) // jnp.int32(_K2 + 1))
        eb = lo + step * arange_k2
        eb = jnp.clip(eb, lo + 1, jnp.maximum(hi - 1, lo + 1))
        ef = lax.bitcast_convert_type(eb, jnp.float32)
        cells = count_call(ef, losses)
        counts = cells.astype(jnp.int32).sum(axis=(1, 2))           # exact
        hi = jnp.minimum(hi, jnp.min(jnp.where(counts <= idx, eb,
                                               jnp.int32(_INF_BITS))))
        lo = jnp.maximum(lo, jnp.max(jnp.where(counts >= idx + 1, eb,
                                               jnp.int32(-1))))
        return lo, hi

    _, hi_f = lax.fori_loop(0, _N_REFINE, _refine, (lo0, hi0))
    threshold = lax.bitcast_convert_type(hi_f, jnp.float32)         # exact rank-idx value

    # ---- Kernel 2: per-batch OHEM masked sum / count --------------------------
    reduce = pl.pallas_call(
        functools.partial(_ohem_reduce_kernel, reduce_mean=reduce_mean),
        out_shape=(jax.ShapeDtypeStruct((B, _SUB, _LANE), jnp.float32),
                   jax.ShapeDtypeStruct((B, _SUB, _LANE), jnp.float32)),
        grid_spec=pltpu.PrefetchScalarGridSpec(
            num_scalar_prefetch=1,
            grid=(B, nt2),
            in_specs=[pl.BlockSpec((1, tr2, _LANE), lambda b, k, t: (b, k, 0))],
            out_specs=[pl.BlockSpec((1, _SUB, _LANE), lambda b, k, t: (b, 0, 0)),
                       pl.BlockSpec((1, _SUB, _LANE), lambda b, k, t: (b, 0, 0))],
        ),
        compiler_params=pltpu.CompilerParams(
            dimension_semantics=("parallel", "arbitrary"),
            vmem_limit_bytes=_VMEM_LIMIT),
        cost_estimate=pl.CostEstimate(
            flops=5 * B * p_pad, transcendentals=0,
            bytes_accessed=loss_bytes * B * p_pad + 8 * B * _SUB * _LANE),
    )
    # TODO(synk): once inputs are bf16, recompute BCE here from logits/target
    # instead of materializing the losses tensor at all.
    sums, cnts = reduce(jnp.reshape(threshold, (1,)).astype(jnp.float32), losses)

    per_batch = sums.reshape(B, -1).sum(axis=-1)
    if reduce_mean:
        per_batch = per_batch / cnts.reshape(B, -1).sum(axis=-1)     # 0/0 -> NaN (PyTorch semantics)
    return per_batch


def _reference(logits, target, max_kept=0.001):
    """Pure-JAX reference mirroring the PyTorch forward exactly."""
    x = logits.astype(jnp.float32)
    y = target.astype(jnp.float32)
    losses = jnp.maximum(x, 0.0) - x * y + jnp.log1p(jnp.exp(-jnp.abs(x)))
    flat_sorted = jnp.sort(losses.reshape(-1))[::-1]
    idx = min(int(max_kept * logits.size), logits.size - 1)
    thr = flat_sorted[idx]
    l2 = losses.reshape(logits.shape[0], -1)
    mask = (l2 > thr).astype(jnp.float32)
    l2 = l2 * mask
    if l2.shape[1] > 1:
        return l2.sum(axis=1) / mask.sum(axis=1)
    return l2.sum(axis=1)


if __name__ == "__main__":
    key = jax.random.PRNGKey(0)
    k1, k2 = jax.random.split(key)
    B, C, H, W = 2, 4, 16, 16
    logits = jax.random.normal(k1, (B, C, H, W), dtype=jnp.float32)
    target = (jax.random.uniform(k2, (B, C, H, W)) > 0.5).astype(jnp.float32)

    out = limited_loss_ohem_cross_entropy(logits, target)
    out = jax.block_until_ready(out)

    ref = _reference(logits, target)
    assert out.shape == (B,), out.shape
    assert jnp.allclose(out, ref, atol=1e-5, rtol=1e-5, equal_nan=True), (out, ref)
    print("KERNEL_OK")
</pallas_src>

<mosaic_0001>
module attributes {stable_mosaic.version = 11 : i64} {
  func.func @_bce_kernel(%arg0: i32, %arg1: i32, %arg2: memref<1x8x128xf32, #tpu.memory_space<vmem>>, %arg3: memref<1x8x128xf32, #tpu.memory_space<vmem>>, %arg4: memref<1x8x128xf32, #tpu.memory_space<vmem>>, %arg5: memref<1x8x8x128xf32, #tpu.memory_space<vmem>>) attributes {dimension_semantics = [#tpu.dimension_semantics<parallel>, #tpu.dimension_semantics<arbitrary>], iteration_bounds = array<i64: 2, 1>, scalar_prefetch = 0 : i64, scratch_operands = 0 : i64, tpu.core_type = #tpu.core_type<tc>, window_params = [{transform_indices = @transform_0, window_bounds = array<i64: 1, 8, 128>}, {transform_indices = @transform_1, window_bounds = array<i64: 1, 8, 128>}, {transform_indices = @transform_2, window_bounds = array<i64: 1, 8, 128>}, {transform_indices = @transform_3, window_bounds = array<i64: 1, 8, 8, 128>}]} {
    %c0_i32 = arith.constant 0 : i32
    %0 = arith.cmpi eq, %arg1, %c0_i32 : i32
    %1 = arith.extui %0 : i1 to i32
    %c0_i32_0 = arith.constant 0 : i32
    %2 = arith.cmpi ne, %1, %c0_i32_0 : i32
    scf.if %2 {
      %cst_99 = arith.constant 0.000000e+00 : f32
      %112 = vector.broadcast %cst_99 : f32 to vector<1x8x8x128xf32>
      %c0_100 = arith.constant 0 : index
      %c0_101 = arith.constant 0 : index
      %c0_102 = arith.constant 0 : index
      %c0_103 = arith.constant 0 : index
      %113 = vector.load %arg5[%c0_100, %c0_101, %c0_102, %c0_103] : memref<1x8x8x128xf32, #tpu.memory_space<vmem>>, vector<1x8x8x128xf32>
      tpu.vector_store %arg5[%c0_100, %c0_101, %c0_102, %c0_103], %112 {strides = array<i32>} : memref<1x8x8x128xf32, #tpu.memory_space<vmem>>, vector<1x8x8x128xf32>,
    } else {
    }
    %c0 = arith.constant 0 : index
    %c0_1 = arith.constant 0 : index
    %c0_2 = arith.constant 0 : index
    %3 = vector.load %arg2[%c0, %c0_1, %c0_2] : memref<1x8x128xf32, #tpu.memory_space<vmem>>, vector<1x8x128xf32>
    %c0_3 = arith.constant 0 : index
    %c0_4 = arith.constant 0 : index
    %c0_5 = arith.constant 0 : index
    %4 = vector.load %arg3[%c0_3, %c0_4, %c0_5] : memref<1x8x128xf32, #tpu.memory_space<vmem>>, vector<1x8x128xf32>
    %cst = arith.constant 0.000000e+00 : f32
    %5 = vector.broadcast %cst : f32 to vector<1x8x128xf32>
    %6 = arith.maximumf %3, %5 : vector<1x8x128xf32>
    %7 = arith.mulf %3, %4 : vector<1x8x128xf32>
    %8 = arith.subf %6, %7 : vector<1x8x128xf32>
    %9 = math.absf %3 : vector<1x8x128xf32>
    %cst_6 = arith.constant 0.000000e+00 : f32
    %10 = vector.broadcast %cst_6 : f32 to vector<1x8x128xf32>
    %11 = arith.subf %10, %9 : vector<1x8x128xf32>
    %12 = math.exp %11 : vector<1x8x128xf32>
    %13 = math.log1p %12 : vector<1x8x128xf32>
    %14 = arith.addf %8, %13 : vector<1x8x128xf32>
    %c0_7 = arith.constant 0 : index
    %c0_8 = arith.constant 0 : index
    %c0_9 = arith.constant 0 : index
    %15 = vector.load %arg4[%c0_7, %c0_8, %c0_9] : memref<1x8x128xf32, #tpu.memory_space<vmem>>, vector<1x8x128xf32>
    tpu.vector_store %arg4[%c0_7, %c0_8, %c0_9], %14 {strides = array<i32>} : memref<1x8x128xf32, #tpu.memory_space<vmem>>, vector<1x8x128xf32>,
    %c0_10 = arith.constant 0 : index
    %c0_11 = arith.constant 0 : index
    %c0_12 = arith.constant 0 : index
    %c0_13 = arith.constant 0 : index
    %16 = vector.load %arg5[%c0_10, %c0_11, %c0_12, %c0_13] : memref<1x8x8x128xf32, #tpu.memory_space<vmem>>, vector<1x1x8x128xf32>
    %17 = vector.shape_cast %16 : vector<1x1x8x128xf32> to vector<8x128xf32>
    %cst_14 = arith.constant 2.10362896E-30 : f32
    %18 = vector.broadcast %cst_14 : f32 to vector<1x8x128xf32>
    %19 = arith.cmpf ogt, %14, %18 : vector<1x8x128xf32>
    %cst_15 = arith.constant 1.000000e+00 : f32
    %cst_16 = arith.constant 0.000000e+00 : f32
    %20 = vector.broadcast %cst_15 : f32 to vector<1x8x128xf32>
    %21 = vector.broadcast %cst_16 : f32 to vector<1x8x128xf32>
    %22 = arith.select %19, %20, %21 : vector<1x8x128xi1>, vector<1x8x128xf32>
    %cst_17 = arith.constant dense<0.000000e+00> : vector<8x128xf32>
    %23 = vector.multi_reduction <add>, %22, %cst_17 [0] : vector<1x8x128xf32> to vector<8x128xf32>
    %24 = arith.addf %17, %23 : vector<8x128xf32>
    %c0_18 = arith.constant 0 : index
    %c0_19 = arith.constant 0 : index
    %c0_20 = arith.constant 0 : index
    %c0_21 = arith.constant 0 : index
    %25 = vector.load %arg5[%c0_18, %c0_19, %c0_20, %c0_21] : memref<1x8x8x128xf32, #tpu.memory_space<vmem>>, vector<1x1x8x128xf32>
    %26 = vector.shape_cast %25 : vector<1x1x8x128xf32> to vector<8x128xf32>
    %27 = vector.shape_cast %24 : vector<8x128xf32> to vector<1x1x8x128xf32>
    tpu.vector_store %arg5[%c0_18, %c0_19, %c0_20, %c0_21], %27 {strides = array<i32>} : memref<1x8x8x128xf32, #tpu.memory_space<vmem>>, vector<1x1x8x128xf32>,
    %c0_22 = arith.constant 0 : index
    %c1 = arith.constant 1 : index
    %c0_23 = arith.constant 0 : index
    %c0_24 = arith.constant 0 : index
    %28 = vector.load %arg5[%c0_22, %c1, %c0_23, %c0_24] : memref<1x8x8x128xf32, #tpu.memory_space<vmem>>, vector<1x1x8x128xf32>
    %29 = vector.shape_cast %28 : vector<1x1x8x128xf32> to vector<8x128xf32>
    %cst_25 = arith.constant 7.05860722E-22 : f32
    %30 = vector.broadcast %cst_25 : f32 to vector<1x8x128xf32>
    %31 = arith.cmpf ogt, %14, %30 : vector<1x8x128xf32>
    %cst_26 = arith.constant 1.000000e+00 : f32
    %cst_27 = arith.constant 0.000000e+00 : f32
    %32 = vector.broadcast %cst_26 : f32 to vector<1x8x128xf32>
    %33 = vector.broadcast %cst_27 : f32 to vector<1x8x128xf32>
    %34 = arith.select %31, %32, %33 : vector<1x8x128xi1>, vector<1x8x128xf32>
    %cst_28 = arith.constant dense<0.000000e+00> : vector<8x128xf32>
    %35 = vector.multi_reduction <add>, %34, %cst_28 [0] : vector<1x8x128xf32> to vector<8x128xf32>
    %36 = arith.addf %29, %35 : vector<8x128xf32>
    %c0_29 = arith.constant 0 : index
    %c1_30 = arith.constant 1 : index
    %c0_31 = arith.constant 0 : index
    %c0_32 = arith.constant 0 : index
    %37 = vector.load %arg5[%c0_29, %c1_30, %c0_31, %c0_32] : memref<1x8x8x128xf32, #tpu.memory_space<vmem>>, vector<1x1x8x128xf32>
    %38 = vector.shape_cast %37 : vector<1x1x8x128xf32> to vector<8x128xf32>
    %39 = vector.shape_cast %36 : vector<8x128xf32> to vector<1x1x8x128xf32>
    tpu.vector_store %arg5[%c0_29, %c1_30, %c0_31, %c0_32], %39 {strides = array<i32>} : memref<1x8x8x128xf32, #tpu.memory_space<vmem>>, vector<1x1x8x128xf32>,
    %c0_33 = arith.constant 0 : index
    %c2 = arith.constant 2 : index
    %c0_34 = arith.constant 0 : index
    %c0_35 = arith.constant 0 : index
    %40 = vector.load %arg5[%c0_33, %c2, %c0_34, %c0_35] : memref<1x8x8x128xf32, #tpu.memory_space<vmem>>, vector<1x1x8x128xf32>
    %41 = vector.shape_cast %40 : vector<1x1x8x128xf32> to vector<8x128xf32>
    %cst_36 = arith.constant 2.27373648E-13 : f32
    %42 = vector.broadcast %cst_36 : f32 to vector<1x8x128xf32>
    %43 = arith.cmpf ogt, %14, %42 : vector<1x8x128xf32>
    %cst_37 = arith.constant 1.000000e+00 : f32
    %cst_38 = arith.constant 0.000000e+00 : f32
    %44 = vector.broadcast %cst_37 : f32 to vector<1x8x128xf32>
    %45 = vector.broadcast %cst_38 : f32 to vector<1x8x128xf32>
    %46 = arith.select %43, %44, %45 : vector<1x8x128xi1>, vector<1x8x128xf32>
    %cst_39 = arith.constant dense<0.000000e+00> : vector<8x128xf32>
    %47 = vector.multi_reduction <add>, %46, %cst_39 [0] : vector<1x8x128xf32> to vector<8x128xf32>
    %48 = arith.addf %41, %47 : vector<8x128xf32>
    %c0_40 = arith.constant 0 : index
    %c2_41 = arith.constant 2 : index
    %c0_42 = arith.constant 0 : index
    %c0_43 = arith.constant 0 : index
    %49 = vector.load %arg5[%c0_40, %c2_41, %c0_42, %c0_43] : memref<1x8x8x128xf32, #tpu.memory_space<vmem>>, vector<1x1x8x128xf32>
    %50 = vector.shape_cast %49 : vector<1x1x8x128xf32> to vector<8x128xf32>
    %51 = vector.shape_cast %48 : vector<8x128xf32> to vector<1x1x8x128xf32>
    tpu.vector_store %arg5[%c0_40, %c2_41, %c0_42, %c0_43], %51 {strides = array<i32>} : memref<1x8x8x128xf32, #tpu.memory_space<vmem>>, vector<1x1x8x128xf32>,
    %c0_44 = arith.constant 0 : index
    %c3 = arith.constant 3 : index
    %c0_45 = arith.constant 0 : index
    %c0_46 = arith.constant 0 : index
    %52 = vector.load %arg5[%c0_44, %c3, %c0_45, %c0_46] : memref<1x8x8x128xf32, #tpu.memory_space<vmem>>, vector<1x1x8x128xf32>
    %53 = vector.shape_cast %52 : vector<1x1x8x128xf32> to vector<8x128xf32>
    %cst_47 = arith.constant 8.13801889E-5 : f32
    %54 = vector.broadcast %cst_47 : f32 to vector<1x8x128xf32>
    %55 = arith.cmpf ogt, %14, %54 : vector<1x8x128xf32>
    %cst_48 = arith.constant 1.000000e+00 : f32
    %cst_49 = arith.constant 0.000000e+00 : f32
    %56 = vector.broadcast %cst_48 : f32 to vector<1x8x128xf32>
    %57 = vector.broadcast %cst_49 : f32 to vector<1x8x128xf32>
    %58 = arith.select %55, %56, %57 : vector<1x8x128xi1>, vector<1x8x128xf32>
    %cst_50 = arith.constant dense<0.000000e+00> : vector<8x128xf32>
    %59 = vector.multi_reduction <add>, %58, %cst_50 [0] : vector<1x8x128xf32> to vector<8x128xf32>
    %60 = arith.addf %53, %59 : vector<8x128xf32>
    %c0_51 = arith.constant 0 : index
    %c3_52 = arith.constant 3 : index
    %c0_53 = arith.constant 0 : index
    %c0_54 = arith.constant 0 : index
    %61 = vector.load %arg5[%c0_51, %c3_52, %c0_53, %c0_54] : memref<1x8x8x128xf32, #tpu.memory_space<vmem>>, vector<1x1x8x128xf32>
    %62 = vector.shape_cast %61 : vector<1x1x8x128xf32> to vector<8x128xf32>
    %63 = vector.shape_cast %60 : vector<8x128xf32> to vector<1x1x8x128xf32>
    tpu.vector_store %arg5[%c0_51, %c3_52, %c0_53, %c0_54], %63 {strides = array<i32>} : memref<1x8x8x128xf32, #tpu.memory_space<vmem>>, vector<1x1x8x128xf32>,
    %c0_55 = arith.constant 0 : index
    %c4 = arith.constant 4 : index
    %c0_56 = arith.constant 0 : index
    %c0_57 = arith.constant 0 : index
    %64 = vector.load %arg5[%c0_55, %c4, %c0_56, %c0_57] : memref<1x8x8x128xf32, #tpu.memory_space<vmem>>, vector<1x1x8x128xf32>
    %65 = vector.shape_cast %64 : vector<1x1x8x128xf32> to vector<8x128xf32>
    %cst_58 = arith.constant 27306.6602 : f32
    %66 = vector.broadcast %cst_58 : f32 to vector<1x8x128xf32>
    %67 = arith.cmpf ogt, %14, %66 : vector<1x8x128xf32>
    %cst_59 = arith.constant 1.000000e+00 : f32
    %cst_60 = arith.constant 0.000000e+00 : f32
    %68 = vector.broadcast %cst_59 : f32 to vector<1x8x128xf32>
    %69 = vector.broadcast %cst_60 : f32 to vector<1x8x128xf32>
    %70 = arith.select %67, %68, %69 : vector<1x8x128xi1>, vector<1x8x128xf32>
    %cst_61 = arith.constant dense<0.000000e+00> : vector<8x128xf32>
    %71 = vector.multi_reduction <add>, %70, %cst_61 [0] : vector<1x8x128xf32> to vector<8x128xf32>
    %72 = arith.addf %65, %71 : vector<8x128xf32>
    %c0_62 = arith.constant 0 : index
    %c4_63 = arith.constant 4 : index
    %c0_64 = arith.constant 0 : index
    %c0_65 = arith.constant 0 : index
    %73 = vector.load %arg5[%c0_62, %c4_63, %c0_64, %c0_65] : memref<1x8x8x128xf32, #tpu.memory_space<vmem>>, vector<1x1x8x128xf32>
    %74 = vector.shape_cast %73 : vector<1x1x8x128xf32> to vector<8x128xf32>
    %75 = vector.shape_cast %72 : vector<8x128xf32> to vector<1x1x8x128xf32>
    tpu.vector_store %arg5[%c0_62, %c4_63, %c0_64, %c0_65], %75 {strides = array<i32>} : memref<1x8x8x128xf32, #tpu.memory_space<vmem>>, vector<1x1x8x128xf32>,
    %c0_66 = arith.constant 0 : index
    %c5 = arith.constant 5 : index
    %c0_67 = arith.constant 0 : index
    %c0_68 = arith.constant 0 : index
    %76 = vector.load %arg5[%c0_66, %c5, %c0_67, %c0_68] : memref<1x8x8x128xf32, #tpu.memory_space<vmem>>, vector<1x1x8x128xf32>
    %77 = vector.shape_cast %76 : vector<1x1x8x128xf32> to vector<8x128xf32>
    %cst_69 = arith.constant 8.79609093E+12 : f32
    %78 = vector.broadcast %cst_69 : f32 to vector<1x8x128xf32>
    %79 = arith.cmpf ogt, %14, %78 : vector<1x8x128xf32>
    %cst_70 = arith.constant 1.000000e+00 : f32
    %cst_71 = arith.constant 0.000000e+00 : f32
    %80 = vector.broadcast %cst_70 : f32 to vector<1x8x128xf32>
    %81 = vector.broadcast %cst_71 : f32 to vector<1x8x128xf32>
    %82 = arith.select %79, %80, %81 : vector<1x8x128xi1>, vector<1x8x128xf32>
    %cst_72 = arith.constant dense<0.000000e+00> : vector<8x128xf32>
    %83 = vector.multi_reduction <add>, %82, %cst_72 [0] : vector<1x8x128xf32> to vector<8x128xf32>
    %84 = arith.addf %77, %83 : vector<8x128xf32>
    %c0_73 = arith.constant 0 : index
    %c5_74 = arith.constant 5 : index
    %c0_75 = arith.constant 0 : index
    %c0_76 = arith.constant 0 : index
    %85 = vector.load %arg5[%c0_73, %c5_74, %c0_75, %c0_76] : memref<1x8x8x128xf32, #tpu.memory_space<vmem>>, vector<1x1x8x128xf32>
    %86 = vector.shape_cast %85 : vector<1x1x8x128xf32> to vector<8x128xf32>
    %87 = vector.shape_cast %84 : vector<8x128xf32> to vector<1x1x8x128xf32>
    tpu.vector_store %arg5[%c0_73, %c5_74, %c0_75, %c0_76], %87 {strides = array<i32>} : memref<1x8x8x128xf32, #tpu.memory_space<vmem>>, vector<1x1x8x128xf32>,
    %c0_77 = arith.constant 0 : index
    %c6 = arith.constant 6 : index
    %c0_78 = arith.constant 0 : index
    %c0_79 = arith.constant 0 : index
    %88 = vector.load %arg5[%c0_77, %c6, %c0_78, %c0_79] : memref<1x8x8x128xf32, #tpu.memory_space<vmem>>, vector<1x1x8x128xf32>
    %89 = vector.shape_cast %88 : vector<1x1x8x128xf32> to vector<8x128xf32>
    %cst_80 = arith.constant 3.14824301E+21 : f32
    %90 = vector.broadcast %cst_80 : f32 to vector<1x8x128xf32>
    %91 = arith.cmpf ogt, %14, %90 : vector<1x8x128xf32>
    %cst_81 = arith.constant 1.000000e+00 : f32
    %cst_82 = arith.constant 0.000000e+00 : f32
    %92 = vector.broadcast %cst_81 : f32 to vector<1x8x128xf32>
    %93 = vector.broadcast %cst_82 : f32 to vector<1x8x128xf32>
    %94 = arith.select %91, %92, %93 : vector<1x8x128xi1>, vector<1x8x128xf32>
    %cst_83 = arith.constant dense<0.000000e+00> : vector<8x128xf32>
    %95 = vector.multi_reduction <add>, %94, %cst_83 [0] : vector<1x8x128xf32> to vector<8x128xf32>
    %96 = arith.addf %89, %95 : vector<8x128xf32>
    %c0_84 = arith.constant 0 : index
    %c6_85 = arith.constant 6 : index
    %c0_86 = arith.constant 0 : index
    %c0_87 = arith.constant 0 : index
    %97 = vector.load %arg5[%c0_84, %c6_85, %c0_86, %c0_87] : memref<1x8x8x128xf32, #tpu.memory_space<vmem>>, vector<1x1x8x128xf32>
    %98 = vector.shape_cast %97 : vector<1x1x8x128xf32> to vector<8x128xf32>
    %99 = vector.shape_cast %96 : vector<8x128xf32> to vector<1x1x8x128xf32>
    tpu.vector_store %arg5[%c0_84, %c6_85, %c0_86, %c0_87], %99 {strides = array<i32>} : memref<1x8x8x128xf32, #tpu.memory_space<vmem>>, vector<1x1x8x128xf32>,
    %c0_88 = arith.constant 0 : index
    %c7 = arith.constant 7 : index
    %c0_89 = arith.constant 0 : index
    %c0_90 = arith.constant 0 : index
    %100 = vector.load %arg5[%c0_88, %c7, %c0_89, %c0_90] : memref<1x8x8x128xf32, #tpu.memory_space<vmem>>, vector<1x1x8x128xf32>
    %101 = vector.shape_cast %100 : vector<1x1x8x128xf32> to vector<8x128xf32>
    %cst_91 = arith.constant 1.0563751E+30 : f32
    %102 = vector.broadcast %cst_91 : f32 to vector<1x8x128xf32>
    %103 = arith.cmpf ogt, %14, %102 : vector<1x8x128xf32>
    %cst_92 = arith.constant 1.000000e+00 : f32
    %cst_93 = arith.constant 0.000000e+00 : f32
    %104 = vector.broadcast %cst_92 : f32 to vector<1x8x128xf32>
    %105 = vector.broadcast %cst_93 : f32 to vector<1x8x128xf32>
    %106 = arith.select %103, %104, %105 : vector<1x8x128xi1>, vector<1x8x128xf32>
    %cst_94 = arith.constant dense<0.000000e+00> : vector<8x128xf32>
    %107 = vector.multi_reduction <add>, %106, %cst_94 [0] : vector<1x8x128xf32> to vector<8x128xf32>
    %108 = arith.addf %101, %107 : vector<8x128xf32>
    %c0_95 = arith.constant 0 : index
    %c7_96 = arith.constant 7 : index
    %c0_97 = arith.constant 0 : index
    %c0_98 = arith.constant 0 : index
    %109 = vector.load %arg5[%c0_95, %c7_96, %c0_97, %c0_98] : memref<1x8x8x128xf32, #tpu.memory_space<vmem>>, vector<1x1x8x128xf32>
    %110 = vector.shape_cast %109 : vector<1x1x8x128xf32> to vector<8x128xf32>
    %111 = vector.shape_cast %108 : vector<8x128xf32> to vector<1x1x8x128xf32>
    tpu.vector_store %arg5[%c0_95, %c7_96, %c0_97, %c0_98], %111 {strides = array<i32>} : memref<1x8x8x128xf32, #tpu.memory_space<vmem>>, vector<1x1x8x128xf32>,
    return
  }
  func.func @transform_0(%arg0: i32, %arg1: i32) -> (i32, i32, i32) {
    %c0_i32 = arith.constant 0 : i32
    %c0_i32_0 = arith.constant 0 : i32
    return %arg0, %arg1, %c0_i32 : i32, i32, i32
  }
  func.func @transform_1(%arg0: i32, %arg1: i32) -> (i32, i32, i32) {
    %c0_i32 = arith.constant 0 : i32
    %c0_i32_0 = arith.constant 0 : i32
    return %arg0, %arg1, %c0_i32 : i32, i32, i32
  }
  func.func @transform_2(%arg0: i32, %arg1: i32) -> (i32, i32, i32) {
    %c0_i32 = arith.constant 0 : i32
    %c0_i32_0 = arith.constant 0 : i32
    return %arg0, %arg1, %c0_i32 : i32, i32, i32
  }
  func.func @transform_3(%arg0: i32, %arg1: i32) -> (i32, i32, i32, i32) {
    %c0_i32 = arith.constant 0 : i32
    %c0_i32_0 = arith.constant 0 : i32
    %c0_i32_1 = arith.constant 0 : i32
    %c0_i32_2 = arith.constant 0 : i32
    return %arg0, %c0_i32, %c0_i32_0, %c0_i32_1 : i32, i32, i32, i32
  }
}

module attributes {stable_mosaic.version = 11 : i64} {
  func.func @_count_gt_kernel(%arg0: i32, %arg1: i32, %arg2: memref<8xf32, #tpu.memory_space<smem>>, %arg3: memref<1x8x128xf32, #tpu.memory_space<vmem>>, %arg4: memref<8x8x128xf32, #tpu.memory_space<vmem>>) attributes {dimension_semantics = [#tpu.dimension_semantics<arbitrary>, #tpu.dimension_semantics<arbitrary>], iteration_bounds = array<i64: 2, 1>, scalar_prefetch = 1 : i64, scratch_operands = 0 : i64, tpu.core_type = #tpu.core_type<tc>, window_params = [{transform_indices = @transform_0, window_bounds = array<i64: 1, 8, 128>}, {pipeline_mode = #tpu.pipeline_mode<synchronous>, transform_indices = @transform_1, window_bounds = array<i64: 8, 8, 128>}]} {
    %c0_i32 = arith.constant 0 : i32
    %0 = arith.cmpi eq, %arg0, %c0_i32 : i32
    %c0_i32_0 = arith.constant 0 : i32
    %1 = arith.cmpi eq, %arg1, %c0_i32_0 : i32
    %2 = arith.andi %0, %1 : i1
    %3 = arith.extui %2 : i1 to i32
    %c0_i32_1 = arith.constant 0 : i32
    %4 = arith.cmpi ne, %3, %c0_i32_1 : i32
    scf.if %4 {
      %cst_76 = arith.constant 0.000000e+00 : f32
      %110 = vector.broadcast %cst_76 : f32 to vector<8x8x128xf32>
      %c0_77 = arith.constant 0 : index
      %c0_78 = arith.constant 0 : index
      %c0_79 = arith.constant 0 : index
      %111 = vector.load %arg4[%c0_77, %c0_78, %c0_79] : memref<8x8x128xf32, #tpu.memory_space<vmem>>, vector<8x8x128xf32>
      tpu.vector_store %arg4[%c0_77, %c0_78, %c0_79], %110 {strides = array<i32>} : memref<8x8x128xf32, #tpu.memory_space<vmem>>, vector<8x8x128xf32>,
    } else {
    }
    %c0 = arith.constant 0 : index
    %c0_2 = arith.constant 0 : index
    %c0_3 = arith.constant 0 : index
    %5 = vector.load %arg3[%c0, %c0_2, %c0_3] : memref<1x8x128xf32, #tpu.memory_space<vmem>>, vector<1x8x128xf32>
    %c0_4 = arith.constant 0 : index
    %6 = memref.load %arg2[%c0_4] : memref<8xf32, #tpu.memory_space<smem>>
    %c0_5 = arith.constant 0 : index
    %c0_6 = arith.constant 0 : index
    %c0_7 = arith.constant 0 : index
    %7 = vector.load %arg4[%c0_5, %c0_6, %c0_7] : memref<8x8x128xf32, #tpu.memory_space<vmem>>, vector<1x8x128xf32>
    %8 = vector.shape_cast %7 : vector<1x8x128xf32> to vector<8x128xf32>
    %9 = vector.broadcast %6 : f32 to vector<1x8x128xf32>
    %10 = arith.cmpf ogt, %5, %9 : vector<1x8x128xf32>
    %cst = arith.constant 1.000000e+00 : f32
    %cst_8 = arith.constant 0.000000e+00 : f32
    %11 = vector.broadcast %cst : f32 to vector<1x8x128xf32>
    %12 = vector.broadcast %cst_8 : f32 to vector<1x8x128xf32>
    %13 = arith.select %10, %11, %12 : vector<1x8x128xi1>, vector<1x8x128xf32>
    %cst_9 = arith.constant dense<0.000000e+00> : vector<8x128xf32>
    %14 = vector.multi_reduction <add>, %13, %cst_9 [0] : vector<1x8x128xf32> to vector<8x128xf32>
    %15 = arith.addf %8, %14 : vector<8x128xf32>
    %c0_10 = arith.constant 0 : index
    %c0_11 = arith.constant 0 : index
    %c0_12 = arith.constant 0 : index
    %16 = vector.load %arg4[%c0_10, %c0_11, %c0_12] : memref<8x8x128xf32, #tpu.memory_space<vmem>>, vector<1x8x128xf32>
    %17 = vector.shape_cast %16 : vector<1x8x128xf32> to vector<8x128xf32>
    %18 = vector.shape_cast %15 : vector<8x128xf32> to vector<1x8x128xf32>
    tpu.vector_store %arg4[%c0_10, %c0_11, %c0_12], %18 {strides = array<i32>} : memref<8x8x128xf32, #tpu.memory_space<vmem>>, vector<1x8x128xf32>,
    %c1 = arith.constant 1 : index
    %19 = memref.load %arg2[%c1] : memref<8xf32, #tpu.memory_space<smem>>
    %c1_13 = arith.constant 1 : index
    %c0_14 = arith.constant 0 : index
    %c0_15 = arith.constant 0 : index
    %20 = vector.load %arg4[%c1_13, %c0_14, %c0_15] : memref<8x8x128xf32, #tpu.memory_space<vmem>>, vector<1x8x128xf32>
    %21 = vector.shape_cast %20 : vector<1x8x128xf32> to vector<8x128xf32>
    %22 = vector.broadcast %19 : f32 to vector<1x8x128xf32>
    %23 = arith.cmpf ogt, %5, %22 : vector<1x8x128xf32>
    %cst_16 = arith.constant 1.000000e+00 : f32
    %cst_17 = arith.constant 0.000000e+00 : f32
    %24 = vector.broadcast %cst_16 : f32 to vector<1x8x128xf32>
    %25 = vector.broadcast %cst_17 : f32 to vector<1x8x128xf32>
    %26 = arith.select %23, %24, %25 : vector<1x8x128xi1>, vector<1x8x128xf32>
    %cst_18 = arith.constant dense<0.000000e+00> : vector<8x128xf32>
    %27 = vector.multi_reduction <add>, %26, %cst_18 [0] : vector<1x8x128xf32> to vector<8x128xf32>
    %28 = arith.addf %21, %27 : vector<8x128xf32>
    %c1_19 = arith.constant 1 : index
    %c0_20 = arith.constant 0 : index
    %c0_21 = arith.constant 0 : index
    %29 = vector.load %arg4[%c1_19, %c0_20, %c0_21] : memref<8x8x128xf32, #tpu.memory_space<vmem>>, vector<1x8x128xf32>
    %30 = vector.shape_cast %29 : vector<1x8x128xf32> to vector<8x128xf32>
    %31 = vector.shape_cast %28 : vector<8x128xf32> to vector<1x8x128xf32>
    tpu.vector_store %arg4[%c1_19, %c0_20, %c0_21], %31 {strides = array<i32>} : memref<8x8x128xf32, #tpu.memory_space<vmem>>, vector<1x8x128xf32>,
    %c2 = arith.constant 2 : index
    %32 = memref.load %arg2[%c2] : memref<8xf32, #tpu.memory_space<smem>>
    %c2_22 = arith.constant 2 : index
    %c0_23 = arith.constant 0 : index
    %c0_24 = arith.constant 0 : index
    %33 = vector.load %arg4[%c2_22, %c0_23, %c0_24] : memref<8x8x128xf32, #tpu.memory_space<vmem>>, vector<1x8x128xf32>
    %34 = vector.shape_cast %33 : vector<1x8x128xf32> to vector<8x128xf32>
    %35 = vector.broadcast %32 : f32 to vector<1x8x128xf32>
    %36 = arith.cmpf ogt, %5, %35 : vector<1x8x128xf32>
    %cst_25 = arith.constant 1.000000e+00 : f32
    %cst_26 = arith.constant 0.000000e+00 : f32
    %37 = vector.broadcast %cst_25 : f32 to vector<1x8x128xf32>
    %38 = vector.broadcast %cst_26 : f32 to vector<1x8x128xf32>
    %39 = arith.select %36, %37, %38 : vector<1x8x128xi1>, vector<1x8x128xf32>
    %cst_27 = arith.constant dense<0.000000e+00> : vector<8x128xf32>
    %40 = vector.multi_reduction <add>, %39, %cst_27 [0] : vector<1x8x128xf32> to vector<8x128xf32>
    %41 = arith.addf %34, %40 : vector<8x128xf32>
    %c2_28 = arith.constant 2 : index
    %c0_29 = arith.constant 0 : index
    %c0_30 = arith.constant 0 : index
    %42 = vector.load %arg4[%c2_28, %c0_29, %c0_30] : memref<8x8x128xf32, #tpu.memory_space<vmem>>, vector<1x8x128xf32>
    %43 = vector.shape_cast %42 : vector<1x8x128xf32> to vector<8x128xf32>
    %44 = vector.shape_cast %41 : vector<8x128xf32> to vector<1x8x128xf32>
    tpu.vector_store %arg4[%c2_28, %c0_29, %c0_30], %44 {strides = array<i32>} : memref<8x8x128xf32, #tpu.memory_space<vmem>>, vector<1x8x128xf32>,
    %c3 = arith.constant 3 : index
    %45 = memref.load %arg2[%c3] : memref<8xf32, #tpu.memory_space<smem>>
    %c3_31 = arith.constant 3 : index
    %c0_32 = arith.constant 0 : index
    %c0_33 = arith.constant 0 : index
    %46 = vector.load %arg4[%c3_31, %c0_32, %c0_33] : memref<8x8x128xf32, #tpu.memory_space<vmem>>, vector<1x8x128xf32>
    %47 = vector.shape_cast %46 : vector<1x8x128xf32> to vector<8x128xf32>
    %48 = vector.broadcast %45 : f32 to vector<1x8x128xf32>
    %49 = arith.cmpf ogt, %5, %48 : vector<1x8x128xf32>
    %cst_34 = arith.constant 1.000000e+00 : f32
    %cst_35 = arith.constant 0.000000e+00 : f32
    %50 = vector.broadcast %cst_34 : f32 to vector<1x8x128xf32>
    %51 = vector.broadcast %cst_35 : f32 to vector<1x8x128xf32>
    %52 = arith.select %49, %50, %51 : vector<1x8x128xi1>, vector<1x8x128xf32>
    %cst_36 = arith.constant dense<0.000000e+00> : vector<8x128xf32>
    %53 = vector.multi_reduction <add>, %52, %cst_36 [0] : vector<1x8x128xf32> to vector<8x128xf32>
    %54 = arith.addf %47, %53 : vector<8x128xf32>
    %c3_37 = arith.constant 3 : index
    %c0_38 = arith.constant 0 : index
    %c0_39 = arith.constant 0 : index
    %55 = vector.load %arg4[%c3_37, %c0_38, %c0_39] : memref<8x8x128xf32, #tpu.memory_space<vmem>>, vector<1x8x128xf32>
    %56 = vector.shape_cast %55 : vector<1x8x128xf32> to vector<8x128xf32>
    %57 = vector.shape_cast %54 : vector<8x128xf32> to vector<1x8x128xf32>
    tpu.vector_store %arg4[%c3_37, %c0_38, %c0_39], %57 {strides = array<i32>} : memref<8x8x128xf32, #tpu.memory_space<vmem>>, vector<1x8x128xf32>,
    %c4 = arith.constant 4 : index
    %58 = memref.load %arg2[%c4] : memref<8xf32, #tpu.memory_space<smem>>
    %c4_40 = arith.constant 4 : index
    %c0_41 = arith.constant 0 : index
    %c0_42 = arith.constant 0 : index
    %59 = vector.load %arg4[%c4_40, %c0_41, %c0_42] : memref<8x8x128xf32, #tpu.memory_space<vmem>>, vector<1x8x128xf32>
    %60 = vector.shape_cast %59 : vector<1x8x128xf32> to vector<8x128xf32>
    %61 = vector.broadcast %58 : f32 to vector<1x8x128xf32>
    %62 = arith.cmpf ogt, %5, %61 : vector<1x8x128xf32>
    %cst_43 = arith.constant 1.000000e+00 : f32
    %cst_44 = arith.constant 0.000000e+00 : f32
    %63 = vector.broadcast %cst_43 : f32 to vector<1x8x128xf32>
    %64 = vector.broadcast %cst_44 : f32 to vector<1x8x128xf32>
    %65 = arith.select %62, %63, %64 : vector<1x8x128xi1>, vector<1x8x128xf32>
    %cst_45 = arith.constant dense<0.000000e+00> : vector<8x128xf32>
    %66 = vector.multi_reduction <add>, %65, %cst_45 [0] : vector<1x8x128xf32> to vector<8x128xf32>
    %67 = arith.addf %60, %66 : vector<8x128xf32>
    %c4_46 = arith.constant 4 : index
    %c0_47 = arith.constant 0 : index
    %c0_48 = arith.constant 0 : index
    %68 = vector.load %arg4[%c4_46, %c0_47, %c0_48] : memref<8x8x128xf32, #tpu.memory_space<vmem>>, vector<1x8x128xf32>
    %69 = vector.shape_cast %68 : vector<1x8x128xf32> to vector<8x128xf32>
    %70 = vector.shape_cast %67 : vector<8x128xf32> to vector<1x8x128xf32>
    tpu.vector_store %arg4[%c4_46, %c0_47, %c0_48], %70 {strides = array<i32>} : memref<8x8x128xf32, #tpu.memory_space<vmem>>, vector<1x8x128xf32>,
    %c5 = arith.constant 5 : index
    %71 = memref.load %arg2[%c5] : memref<8xf32, #tpu.memory_space<smem>>
    %c5_49 = arith.constant 5 : index
    %c0_50 = arith.constant 0 : index
    %c0_51 = arith.constant 0 : index
    %72 = vector.load %arg4[%c5_49, %c0_50, %c0_51] : memref<8x8x128xf32, #tpu.memory_space<vmem>>, vector<1x8x128xf32>
    %73 = vector.shape_cast %72 : vector<1x8x128xf32> to vector<8x128xf32>
    %74 = vector.broadcast %71 : f32 to vector<1x8x128xf32>
    %75 = arith.cmpf ogt, %5, %74 : vector<1x8x128xf32>
    %cst_52 = arith.constant 1.000000e+00 : f32
    %cst_53 = arith.constant 0.000000e+00 : f32
    %76 = vector.broadcast %cst_52 : f32 to vector<1x8x128xf32>
    %77 = vector.broadcast %cst_53 : f32 to vector<1x8x128xf32>
    %78 = arith.select %75, %76, %77 : vector<1x8x128xi1>, vector<1x8x128xf32>
    %cst_54 = arith.constant dense<0.000000e+00> : vector<8x128xf32>
    %79 = vector.multi_reduction <add>, %78, %cst_54 [0] : vector<1x8x128xf32> to vector<8x128xf32>
    %80 = arith.addf %73, %79 : vector<8x128xf32>
    %c5_55 = arith.constant 5 : index
    %c0_56 = arith.constant 0 : index
    %c0_57 = arith.constant 0 : index
    %81 = vector.load %arg4[%c5_55, %c0_56, %c0_57] : memref<8x8x128xf32, #tpu.memory_space<vmem>>, vector<1x8x128xf32>
    %82 = vector.shape_cast %81 : vector<1x8x128xf32> to vector<8x128xf32>
    %83 = vector.shape_cast %80 : vector<8x128xf32> to vector<1x8x128xf32>
    tpu.vector_store %arg4[%c5_55, %c0_56, %c0_57], %83 {strides = array<i32>} : memref<8x8x128xf32, #tpu.memory_space<vmem>>, vector<1x8x128xf32>,
    %c6 = arith.constant 6 : index
    %84 = memref.load %arg2[%c6] : memref<8xf32, #tpu.memory_space<smem>>
    %c6_58 = arith.constant 6 : index
    %c0_59 = arith.constant 0 : index
    %c0_60 = arith.constant 0 : index
    %85 = vector.load %arg4[%c6_58, %c0_59, %c0_60] : memref<8x8x128xf32, #tpu.memory_space<vmem>>, vector<1x8x128xf32>
    %86 = vector.shape_cast %85 : vector<1x8x128xf32> to vector<8x128xf32>
    %87 = vector.broadcast %84 : f32 to vector<1x8x128xf32>
    %88 = arith.cmpf ogt, %5, %87 : vector<1x8x128xf32>
    %cst_61 = arith.constant 1.000000e+00 : f32
    %cst_62 = arith.constant 0.000000e+00 : f32
    %89 = vector.broadcast %cst_61 : f32 to vector<1x8x128xf32>
    %90 = vector.broadcast %cst_62 : f32 to vector<1x8x128xf32>
    %91 = arith.select %88, %89, %90 : vector<1x8x128xi1>, vector<1x8x128xf32>
    %cst_63 = arith.constant dense<0.000000e+00> : vector<8x128xf32>
    %92 = vector.multi_reduction <add>, %91, %cst_63 [0] : vector<1x8x128xf32> to vector<8x128xf32>
    %93 = arith.addf %86, %92 : vector<8x128xf32>
    %c6_64 = arith.constant 6 : index
    %c0_65 = arith.constant 0 : index
    %c0_66 = arith.constant 0 : index
    %94 = vector.load %arg4[%c6_64, %c0_65, %c0_66] : memref<8x8x128xf32, #tpu.memory_space<vmem>>, vector<1x8x128xf32>
    %95 = vector.shape_cast %94 : vector<1x8x128xf32> to vector<8x128xf32>
    %96 = vector.shape_cast %93 : vector<8x128xf32> to vector<1x8x128xf32>
    tpu.vector_store %arg4[%c6_64, %c0_65, %c0_66], %96 {strides = array<i32>} : memref<8x8x128xf32, #tpu.memory_space<vmem>>, vector<1x8x128xf32>,
    %c7 = arith.constant 7 : index
    %97 = memref.load %arg2[%c7] : memref<8xf32, #tpu.memory_space<smem>>
    %c7_67 = arith.constant 7 : index
    %c0_68 = arith.constant 0 : index
    %c0_69 = arith.constant 0 : index
    %98 = vector.load %arg4[%c7_67, %c0_68, %c0_69] : memref<8x8x128xf32, #tpu.memory_space<vmem>>, vector<1x8x128xf32>
    %99 = vector.shape_cast %98 : vector<1x8x128xf32> to vector<8x128xf32>
    %100 = vector.broadcast %97 : f32 to vector<1x8x128xf32>
    %101 = arith.cmpf ogt, %5, %100 : vector<1x8x128xf32>
    %cst_70 = arith.constant 1.000000e+00 : f32
    %cst_71 = arith.constant 0.000000e+00 : f32
    %102 = vector.broadcast %cst_70 : f32 to vector<1x8x128xf32>
    %103 = vector.broadcast %cst_71 : f32 to vector<1x8x128xf32>
    %104 = arith.select %101, %102, %103 : vector<1x8x128xi1>, vector<1x8x128xf32>
    %cst_72 = arith.constant dense<0.000000e+00> : vector<8x128xf32>
    %105 = vector.multi_reduction <add>, %104, %cst_72 [0] : vector<1x8x128xf32> to vector<8x128xf32>
    %106 = arith.addf %99, %105 : vector<8x128xf32>
    %c7_73 = arith.constant 7 : index
    %c0_74 = arith.constant 0 : index
    %c0_75 = arith.constant 0 : index
    %107 = vector.load %arg4[%c7_73, %c0_74, %c0_75] : memref<8x8x128xf32, #tpu.memory_space<vmem>>, vector<1x8x128xf32>
    %108 = vector.shape_cast %107 : vector<1x8x128xf32> to vector<8x128xf32>
    %109 = vector.shape_cast %106 : vector<8x128xf32> to vector<1x8x128xf32>
    tpu.vector_store %arg4[%c7_73, %c0_74, %c0_75], %109 {strides = array<i32>} : memref<8x8x128xf32, #tpu.memory_space<vmem>>, vector<1x8x128xf32>,
    return
  }
  func.func @transform_0(%arg0: i32, %arg1: i32, %arg2: memref<8xf32, #tpu.memory_space<smem>>) -> (i32, i32, i32) {
    %c0_i32 = arith.constant 0 : i32
    %c0_i32_0 = arith.constant 0 : i32
    return %arg0, %arg1, %c0_i32 : i32, i32, i32
  }
  func.func @transform_1(%arg0: i32, %arg1: i32, %arg2: memref<8xf32, #tpu.memory_space<smem>>) -> (i32, i32, i32) {
    %c0_i32 = arith.constant 0 : i32
    %c0_i32_0 = arith.constant 0 : i32
    %c0_i32_1 = arith.constant 0 : i32
    %c0_i32_2 = arith.constant 0 : i32
    return %c0_i32, %c0_i32_0, %c0_i32_1 : i32, i32, i32
  }
}

module attributes {stable_mosaic.version = 11 : i64} {
  func.func @_ohem_reduce_kernel(%arg0: i32, %arg1: i32, %arg2: memref<1xf32, #tpu.memory_space<smem>>, %arg3: memref<1x8x128xf32, #tpu.memory_space<vmem>>, %arg4: memref<1x8x128xf32, #tpu.memory_space<vmem>>, %arg5: memref<1x8x128xf32, #tpu.memory_space<vmem>>) attributes {dimension_semantics = [#tpu.dimension_semantics<parallel>, #tpu.dimension_semantics<arbitrary>], iteration_bounds = array<i64: 2, 1>, scalar_prefetch = 1 : i64, scratch_operands = 0 : i64, tpu.core_type = #tpu.core_type<tc>, window_params = [{transform_indices = @transform_0, window_bounds = array<i64: 1, 8, 128>}, {transform_indices = @transform_1, window_bounds = array<i64: 1, 8, 128>}, {transform_indices = @transform_2, window_bounds = array<i64: 1, 8, 128>}]} {
    %c0_i32 = arith.constant 0 : i32
    %0 = arith.cmpi eq, %arg1, %c0_i32 : i32
    %1 = arith.extui %0 : i1 to i32
    %c0_i32_0 = arith.constant 0 : i32
    %2 = arith.cmpi ne, %1, %c0_i32_0 : i32
    scf.if %2 {
      %cst_20 = arith.constant 0.000000e+00 : f32
      %26 = vector.broadcast %cst_20 : f32 to vector<1x8x128xf32>
      %c0_21 = arith.constant 0 : index
      %c0_22 = arith.constant 0 : index
      %c0_23 = arith.constant 0 : index
      %27 = vector.load %arg4[%c0_21, %c0_22, %c0_23] : memref<1x8x128xf32, #tpu.memory_space<vmem>>, vector<1x8x128xf32>
      tpu.vector_store %arg4[%c0_21, %c0_22, %c0_23], %26 {strides = array<i32>} : memref<1x8x128xf32, #tpu.memory_space<vmem>>, vector<1x8x128xf32>,
      %cst_24 = arith.constant 0.000000e+00 : f32
      %28 = vector.broadcast %cst_24 : f32 to vector<1x8x128xf32>
      %c0_25 = arith.constant 0 : index
      %c0_26 = arith.constant 0 : index
      %c0_27 = arith.constant 0 : index
      %29 = vector.load %arg5[%c0_25, %c0_26, %c0_27] : memref<1x8x128xf32, #tpu.memory_space<vmem>>, vector<1x8x128xf32>
      tpu.vector_store %arg5[%c0_25, %c0_26, %c0_27], %28 {strides = array<i32>} : memref<1x8x128xf32, #tpu.memory_space<vmem>>, vector<1x8x128xf32>,
    } else {
    }
    %c0 = arith.constant 0 : index
    %3 = memref.load %arg2[%c0] : memref<1xf32, #tpu.memory_space<smem>>
    %c0_1 = arith.constant 0 : index
    %c0_2 = arith.constant 0 : index
    %c0_3 = arith.constant 0 : index
    %4 = vector.load %arg3[%c0_1, %c0_2, %c0_3] : memref<1x8x128xf32, #tpu.memory_space<vmem>>, vector<1x8x128xf32>
    %5 = vector.broadcast %3 : f32 to vector<1x8x128xf32>
    %6 = arith.cmpf ogt, %4, %5 : vector<1x8x128xf32>
    %c0_4 = arith.constant 0 : index
    %c0_5 = arith.constant 0 : index
    %c0_6 = arith.constant 0 : index
    %7 = vector.load %arg4[%c0_4, %c0_5, %c0_6] : memref<1x8x128xf32, #tpu.memory_space<vmem>>, vector<1x8x128xf32>
    %8 = vector.shape_cast %7 : vector<1x8x128xf32> to vector<8x128xf32>
    %cst = arith.constant 0.000000e+00 : f32
    %9 = vector.broadcast %cst : f32 to vector<1x8x128xf32>
    %10 = arith.select %6, %4, %9 : vector<1x8x128xi1>, vector<1x8x128xf32>
    %cst_7 = arith.constant dense<0.000000e+00> : vector<8x128xf32>
    %11 = vector.multi_reduction <add>, %10, %cst_7 [0] : vector<1x8x128xf32> to vector<8x128xf32>
    %12 = arith.addf %8, %11 : vector<8x128xf32>
    %c0_8 = arith.constant 0 : index
    %c0_9 = arith.constant 0 : index
    %c0_10 = arith.constant 0 : index
    %13 = vector.load %arg4[%c0_8, %c0_9, %c0_10] : memref<1x8x128xf32, #tpu.memory_space<vmem>>, vector<1x8x128xf32>
    %14 = vector.shape_cast %13 : vector<1x8x128xf32> to vector<8x128xf32>
    %15 = vector.shape_cast %12 : vector<8x128xf32> to vector<1x8x128xf32>
    tpu.vector_store %arg4[%c0_8, %c0_9, %c0_10], %15 {strides = array<i32>} : memref<1x8x128xf32, #tpu.memory_space<vmem>>, vector<1x8x128xf32>,
    %c0_11 = arith.constant 0 : index
    %c0_12 = arith.constant 0 : index
    %c0_13 = arith.constant 0 : index
    %16 = vector.load %arg5[%c0_11, %c0_12, %c0_13] : memref<1x8x128xf32, #tpu.memory_space<vmem>>, vector<1x8x128xf32>
    %17 = vector.shape_cast %16 : vector<1x8x128xf32> to vector<8x128xf32>
    %cst_14 = arith.constant 1.000000e+00 : f32
    %cst_15 = arith.constant 0.000000e+00 : f32
    %18 = vector.broadcast %cst_14 : f32 to vector<1x8x128xf32>
    %19 = vector.broadcast %cst_15 : f32 to vector<1x8x128xf32>
    %20 = arith.select %6, %18, %19 : vector<1x8x128xi1>, vector<1x8x128xf32>
    %cst_16 = arith.constant dense<0.000000e+00> : vector<8x128xf32>
    %21 = vector.multi_reduction <add>, %20, %cst_16 [0] : vector<1x8x128xf32> to vector<8x128xf32>
    %22 = arith.addf %17, %21 : vector<8x128xf32>
    %c0_17 = arith.constant 0 : index
    %c0_18 = arith.constant 0 : index
    %c0_19 = arith.constant 0 : index
    %23 = vector.load %arg5[%c0_17, %c0_18, %c0_19] : memref<1x8x128xf32, #tpu.memory_space<vmem>>, vector<1x8x128xf32>
    %24 = vector.shape_cast %23 : vector<1x8x128xf32> to vector<8x128xf32>
    %25 = vector.shape_cast %22 : vector<8x128xf32> to vector<1x8x128xf32>
    tpu.vector_store %arg5[%c0_17, %c0_18, %c0_19], %25 {strides = array<i32>} : memref<1x8x128xf32, #tpu.memory_space<vmem>>, vector<1x8x128xf32>,
    return
  }
  func.func @transform_0(%arg0: i32, %arg1: i32, %arg2: memref<1xf32, #tpu.memory_space<smem>>) -> (i32, i32, i32) {
    %c0_i32 = arith.constant 0 : i32
    %c0_i32_0 = arith.constant 0 : i32
    return %arg0, %arg1, %c0_i32 : i32, i32, i32
  }
  func.func @transform_1(%arg0: i32, %arg1: i32, %arg2: memref<1xf32, #tpu.memory_space<smem>>) -> (i32, i32, i32) {
    %c0_i32 = arith.constant 0 : i32
    %c0_i32_0 = arith.constant 0 : i32
    %c0_i32_1 = arith.constant 0 : i32
    return %arg0, %c0_i32, %c0_i32_0 : i32, i32, i32
  }
  func.func @transform_2(%arg0: i32, %arg1: i32, %arg2: memref<1xf32, #tpu.memory_space<smem>>) -> (i32, i32, i32) {
    %c0_i32 = arith.constant 0 : i32
    %c0_i32_0 = arith.constant 0 : i32
    %c0_i32_1 = arith.constant 0 : i32
    return %arg0, %c0_i32, %c0_i32_0 : i32, i32, i32
  }
}

</mosaic_0001>

<bundles_post_ra>
// kernel: div.3
= control target key start
LH: loop header
LB: loop body
LE: loop exit
PB: predicated region body
PF: predicated region fallthrough
CT: control target
= control target key end

     0   :  { %3 = vsyncpa [#allocation1], 0  ;;  %s83_s0 = inlined_call_operand.vmem [shape: f32[2], index: 0, kind: input, shape index: {}]   ;;  %s84_s1 = inlined_call_operand.vmem [shape: f32[2], index: 1, kind: input, shape index: {}]   ;;  %s85_s2 = inlined_call_operand.hbm [shape: f32[2], index: 2, kind: output, shape index: {}]  }
   0x1   :  { %v5_v0 = vld [vmem:[%s84_s1] sm:$0x1] }
   0x2   :  { %23 = vrcp.f32 %v5_v0  ;;  %v4_v1 = vld [vmem:[%s83_s0] sm:$0x1]  ;;  %s49_s0 = smov [#allocation0]  }
   0x3   :  { %s16_s12 = sshll.u32 %s49_s0, 4  ;;  %s17_s12 = int_to_ptr.vmem [resolvable:$true] %s16_s12 }
   0x4   :  { %s25_s13 = scalar_lea.vmem %s17_s12, 16  ;;  %s29_s14 = scalar_lea.vmem %s17_s12, 32 }
   0x5   :  { %p26_p0 = scmp.ne.s32.totalorder %s17_s12, %s25_s13  ;;  %p30_p1 = scmp.lt.s32.totalorder %s17_s12, %s17_s12 }
   0x6   :  { %p31_p2 = scmp.lt.s32.totalorder %s29_s14, %s25_s13 }
   0x8   :  { %p32_p3 = por %p31_p2, %p30_p1 }
   0xa   :  { %p33_p4 = pnand %p32_p3, %p26_p0 }
   0xc   :  { %v24_v2 = vpop.eup %23 }
   0xd   :  { %v9_v3 = vmul.f32 %v24_v2, %v4_v1 }
   0xf   :  { %11 = vst [vmem:[#allocation0] sm:$0x1] %v9_v3 }
  0x10   :  { %36 = shalt.err (!%p33_p4)
}
  0x11   :  { %s37_s17 = scalar_lea.hbm %s85_s2, 16 }
  0x12   :  { %p38_p5 = scmp.ne.s32.totalorder %s85_s2, %s37_s17  ;;  %p41_p6 = scmp.lt.u32.totalorder %s37_s17, %s85_s2 }
  0x14   :  { %p43_p7 = pnand %p41_p6, %p38_p5 }
  0x16   :  { %46 = shalt.err (!%p43_p7)
}
  0x17   :  { %19 = dma.vmem_to_hbm [thread:$0]  %s17_s12, 16, %s85_s2, [#allocation1]  }
  0x18   :  { %47 = dma.done.wait [#allocation1], 16  }
  0x19   :  { %48 = vsyncadd [#allocation1], 4294967280 }
  0x1a   :  { %21 = vsyncpa [#allocation1], 1 }

// kernel: limited_loss_ohem_cross_entropy.2
= control target key start
LH: loop header
LB: loop body
LE: loop exit
PB: predicated region body
PF: predicated region fallthrough
CT: control target
= control target key end

     0   :  { %s548_s12 = smov 0   ;;  %s550_s13 = smov 0   ;;  %s591_s0 = inlined_call_operand.vmem [shape: f32[2,8,128], index: 0, kind: input, shape index: {}]   ;;  %s592_s1 = inlined_call_operand.vmem [shape: f32[2,8,128], index: 1, kind: input, shape index: {}]   ;;  %s593_s2 = inlined_call_operand.vmem [shape: f32[2,8,128], index: 2, kind: output, shape index: {0}]   ;;  %s594_s3 = inlined_call_operand.vmem [shape: f32[2,8,8,128], index: 3, kind: output, shape index: {1}]  }
   0x1   :  { %s552_s14 = smov 0  }
   0x2 LB: > { %s26_s15 = sadd.s32 1, %s521_s13  ;;  %p451_p0 = scmp.ge.s32.totalorder %s525_s14, 1  ;;  %s525_s14 = sphi %s552_s14, %s14_s14   ;;  %s521_s13 = sphi %s550_s13, %s596_s13   ;;  %s517_s12 = sphi %s548_s12, %s595_s12  }
   0x3   : > { %p28_p1 = scmp.ge.s32.totalorder %s26_s15, 2  ;;  %p172_p2 = scmp.lt.s32.totalorder %s525_s14, 3 }
   0x5   : > { %s598_s15 = smov (%p28_p1, %s26_s15), 0  ;;  %p173_p3 = pnand %p451_p0, %p172_p2 }
   0x6   : > { %p212_p4 = scmp.lt.s32.totalorder (!%p173_p3), %s517_s12, 1  ;;  %v527_v18 = vmov (!%p173_p3), 0.0  }
   0x7   : > { %176 = sbr.rel (%p173_p3) target bundleno = 60 (0x3c), region = 28 }
   0xe   : > { %s600_s12 = smov (!%p212_p4, %s517_s12), 1 }
   0xf   : > { %s452_s16 = sshll.u32 %s600_s12, 3  ;;  %s473_s26 = sshll.u32 %s600_s12, 6 }
  0x10   : > { %s218_s19 = scalar_lea.vmem %s591_s0, %s452_s16  ;;  %s225_s22 = scalar_lea.vmem %s592_s1, %s452_s16 }
  0x11   : > { %v250_v0 = vld [vmem:[%s218_s19] sm:$0xff]  ;;  %s232_s25 = scalar_lea.vmem %s593_s2, %s452_s16  ;;  %s237_s29 = scalar_lea.vmem %s594_s3, %s473_s26 }
  0x12   : > { %v255_v1 = vand.u32 2147483647, %v250_v0  ;;  %v251_v7 = vld [vmem:[%s225_s22] sm:$0xff]  ;;  %v252_v9 = vmax.f32 %v250_v0, 0.0 }
  0x13   : > { %v253_v10 = vmul.f32 %v251_v7, %v250_v0 }
  0x14   : > { %v256_v2 = vsub.f32 0.0, %v255_v1 }
  0x15   : > { %v254_v14 = vsub.f32 %v252_v9, %v253_v10 }
  0x16   : > { %v257_v3 = vmul.f32 1.442695, %v256_v2 }
  0x18   : > { %499 = vpow2.f32 %v257_v3 }
  0x22   : > { %v500_v4 = vpop.eup %499 }
  0x23   : > { %v259_v5 = vadd.f32 1.0, %v500_v4  ;;  %v262_v6 = vmul.f32 -0.5, %v500_v4  ;;  %v265_v11 = vand.u32 2147483647, %v500_v4 }
  0x25   : > { %501 = vlog2.f32 %v259_v5  ;;  %v263_v8 = vadd.f32 1.0, %v262_v6  ;;  %vm266_vm0 = vcmp.lt.f32.partialorder %v265_v11, 0.0004427343 }
  0x27   : > { %v264_v12 = vmul.f32 %v500_v4, %v263_v8 }
  0x2f   : > { %v502_v13 = vpop.eup %501 }
  0x30   : > { %v261_v15 = vmul.f32 0.6931472, %v502_v13 }
  0x32   : > { %v267_v16 = vsel %vm266_vm0, %v264_v12, %v261_v15 }
  0x33   : > { %v268_v17 = vadd.f32 %v267_v16, %v254_v14 }
  0x35   : > { %269 = vst [vmem:[%s232_s25] sm:$0xff] %v268_v17  ;;  %vm271_vm1 = vcmp.gt.f32.partialorder %v268_v17, 2.103629e-30  ;;  %vm278_vm2 = vcmp.gt.f32.partialorder %v268_v17, 7.058607e-22  ;;  %vm285_vm3 = vcmp.gt.f32.partialorder %v268_v17, 2.2737365e-13 }
  0x36   : > { %v272_v19 = vsel %vm271_vm1, 1.0, %v527_v18  ;;  %v279_v20 = vsel %vm278_vm2, 1.0, %v527_v18  ;;  %v286_v21 = vsel %vm285_vm3, 1.0, %v527_v18  ;;  %vm292_vm4 = vcmp.gt.f32.partialorder %v268_v17, 8.138019e-05 }
  0x37   : > { %v293_v22 = vsel %vm292_vm4, 1.0, %v527_v18  ;;  %vm299_vm5 = vcmp.gt.f32.partialorder %v268_v17, 27306.66  ;;  %vm306_vm6 = vcmp.gt.f32.partialorder %v268_v17, 8.796091e+12  ;;  %275 = vst [vmem:[%s237_s29] sm:$0xff] %v272_v19  ;;  %458 = vst [vmem:[%s237_s29 + $0x8] sm:$0xff] %v279_v20 }
  0x38   : > { %vm313_vm7 = vcmp.gt.f32.partialorder %v268_v17, 3.148243e+21  ;;  %460 = vst [vmem:[%s237_s29 + $0x10] sm:$0xff] %v286_v21  ;;  %v300_v23 = vsel %vm299_vm5, 1.0, %v527_v18  ;;  %v307_v24 = vsel %vm306_vm6, 1.0, %v527_v18  ;;  %462 = vst [vmem:[%s237_s29 + $0x18] sm:$0xff] %v293_v22 }
  0x39   : > { %v314_v25 = vsel %vm313_vm7, 1.0, %v527_v18  ;;  %vm320_vm8 = vcmp.gt.f32.partialorder %v268_v17, 1.0563751e+30  ;;  %464 = vst [vmem:[%s237_s29 + $0x20] sm:$0xff] %v300_v23  ;;  %466 = vst [vmem:[%s237_s29 + $0x28] sm:$0xff] %v307_v24 }
  0x3a   : > { %v321_v26 = vsel %vm320_vm8, 1.0, %v527_v18  ;;  %468 = vst [vmem:[%s237_s29 + $0x30] sm:$0xff] %v314_v25 }
  0x3b   : > { %470 = vst [vmem:[%s237_s29 + $0x38] sm:$0xff] %v321_v26 }
  0x3c PF: > { %s14_s14 = sadd.s32 1, %s525_s14   ;;  %s595_s12 = smov %s521_s13 }
  0x3d   : > { %p11_p5 = scmp.ge.s32.totalorder %s14_s14, 4   ;;  %s596_s13 = smov %s598_s15 }
  0x3f   :  { %13 = sbr.rel (!%p11_p5) target bundleno = 2 (0x2), region = 84 }

// kernel: limited_loss_ohem_cross_entropy.3
= control target key start
LH: loop header
LB: loop body
LE: loop exit
PB: predicated region body
PF: predicated region fallthrough
CT: control target
= control target key end

     0   :  { %s373_s14 = smov 0   ;;  %s375_s15 = smov 0   ;;  %s397_s0 = inlined_call_operand.<no memory space> [shape: f32[1], index: 0, kind: input, shape index: {}]   ;;  %s398_s1 = inlined_call_operand.vmem [shape: f32[2,8,128], index: 1, kind: input, shape index: {}]   ;;  %s399_s2 = inlined_call_operand.vmem [shape: f32[2,8,128], index: 2, kind: output, shape index: {0}]   ;;  %s400_s3 = inlined_call_operand.vmem [shape: f32[2,8,128], index: 3, kind: output, shape index: {1}]  }
   0x1   :  { %9 = sst [smem:[#allocation3]] %s397_s0  ;;  %s377_s16 = smov 0  }
   0x2 LB: > { %s27_s17 = sadd.s32 1, %s343_s15  ;;  %p294_p0 = scmp.ge.s32.totalorder %s347_s16, 1  ;;  %s347_s16 = sphi %s377_s16, %s15_s16   ;;  %s343_s15 = sphi %s375_s15, %s402_s15   ;;  %s339_s14 = sphi %s373_s14, %s401_s14  }
   0x3   : > { %p29_p1 = scmp.ge.s32.totalorder %s27_s17, 2  ;;  %p133_p2 = scmp.lt.s32.totalorder %s347_s16, 3 }
   0x5   : > { %s404_s17 = smov (%p29_p1, %s27_s17), 0  ;;  %p134_p3 = pnand %p294_p0, %p133_p2 }
   0x6   : > { %p160_p4 = scmp.lt.s32.totalorder (!%p134_p3), %s339_s14, 1  ;;  %s181_s0 = sld [smem:[#allocation3]] (!%p134_p3)  ;;  %v349_v2 = vmov (!%p134_p3), 0.0  }
   0x7   : > { %137 = sbr.rel (%p134_p3) target bundleno = 21 (0x15), region = 24 }
   0xc   : > { %v183_v1 = vstv (!%p134_p3), %s181_s0 }
   0xe   : > { %s406_s14 = smov (!%p160_p4, %s339_s14), 1 }
   0xf   : > { %s295_s18 = sshll.u32 %s406_s14, 3 }
  0x10   : > { %s166_s21 = scalar_lea.vmem %s398_s1, %s295_s18  ;;  %s170_s24 = scalar_lea.vmem %s399_s2, %s295_s18 }
  0x11   : > { %v182_v0 = vld [vmem:[%s166_s21] sm:$0xff]  ;;  %s174_s27 = scalar_lea.vmem %s400_s3, %s295_s18 }
  0x12   : > { %vm184_vm0 = vcmp.gt.f32.partialorder %v182_v0, %v183_v1 }
  0x13   : > { %v191_v3 = vsel %vm184_vm0, 1.0, %v349_v2  ;;  %v186_v4 = vsel %vm184_vm0, %v182_v0, 0.0 }
  0x14   : > { %189 = vst [vmem:[%s170_s24] sm:$0xff] %v186_v4  ;;  %194 = vst [vmem:[%s174_s27] sm:$0xff] %v191_v3 }
  0x15 PF: > { %s15_s16 = sadd.s32 1, %s347_s16   ;;  %s401_s14 = smov %s343_s15 }
  0x16   : > { %p12_p5 = scmp.ge.s32.totalorder %s15_s16, 4   ;;  %s402_s15 = smov %s404_s17 }
  0x18   :  { %14 = sbr.rel (!%p12_p5) target bundleno = 2 (0x2), region = 70 }

// kernel: closed_call.11
= control target key start
LH: loop header
LB: loop body
LE: loop exit
PB: predicated region body
PF: predicated region fallthrough
CT: control target
= control target key end

     0   :  { %s481_s0 = inlined_call_operand.vmem [shape: f32[8], index: 0, kind: input, shape index: {}]   ;;  %s482_s1 = inlined_call_operand.vmem [shape: f32[2,8,128], index: 1, kind: input, shape index: {}]   ;;  %s483_s2 = inlined_call_operand.vmem [shape: f32[8,8,128], index: 2, kind: output, shape index: {}]  }
   0x1   :  { %s7_s11 = sshll.u32 %s481_s0, 4  ;;  %s8_s11 = int_to_ptr.vmem [resolvable:$true] %s7_s11 }
   0x2   :  { %s311_s12 = scalar_lea.vmem %s8_s11, 16  ;;  %p316_p1 = scmp.lt.s32.totalorder %s8_s11, %s8_s11 }
   0x3   :  { %p312_p0 = scmp.ne.s32.totalorder %s8_s11, %s311_s12  ;;  %p317_p2 = scmp.lt.s32.totalorder %s311_s12, %s311_s12 }
   0x5   :  { %p318_p3 = por %p317_p2, %p316_p1 }
   0x7   :  { %p319_p4 = pnand %p318_p3, %p312_p0 }
   0x9   :  { %322 = shalt.err (!%p319_p4)  }
   0xa   :  { %s349_s13 = smov [#allocation3]  }
   0xb   :  { %10 = dma.vmem_to_smem %s8_s11, 16, %s349_s13, [#allocation2] }
   0xc   :  { %335 = dma.done.wait [#allocation2], 16 }
   0xd   :  { %336 = vsyncadd [#allocation2], 4294967280 }
   0xe   :  { %12 = sfence }
   0xf   :  { %s370_s14 = smov 0   ;;  %s372_s15 = smov 0  }
  0x10   :  { %s374_s16 = smov 0  }
  0x11 LB: > { %s30_s0 = sadd.s32 1, %s343_s15  ;;  %p257_p5 = scmp.ge.s32.totalorder %s347_s16, 1  ;;  %s347_s16 = sphi %s374_s16, %s18_s16   ;;  %s343_s15 = sphi %s372_s15, %s485_s15   ;;  %s339_s14 = sphi %s370_s14, %s484_s14  }
  0x12   : > { %p32_p6 = scmp.ge.s32.totalorder %s30_s0, 2  ;;  %p105_p7 = scmp.lt.s32.totalorder %s347_s16, 3 }
  0x14   : > { %s487_s0 = smov (%p32_p6, %s30_s0), 0  ;;  %p106_p8 = pnand %p257_p5, %p105_p7 }
  0x15   : > { %p122_p9 = scmp.lt.s32.totalorder (!%p106_p8), %s339_s14, 1  ;;  %p129_p10 = scmp.eq.s32.totalorder (!%p106_p8), %s339_s14, 0 }
  0x16   : > { %109 = sbr.rel (%p106_p8) target bundleno = 53 (0x35), region = 24 }
  0x1d   : > { %s489_s14 = smov (!%p122_p9, %s339_s14), 1  ;;  %134 = sbr.rel (!%p129_p10) target bundleno = 36 (0x24), region = 28 }
  0x1e   : > { %s258_s17 = sshll.u32 %s489_s14, 3  ;;  %v350_v0 = vmov (%p129_p10), 0.0  }
  0x1f   : > { %s128_s20 = scalar_lea.vmem %s482_s1, %s258_s17  ;;  %135 = vst [vmem:[%s483_s2] sm:$0xff] (%p129_p10), %v350_v0  ;;  %136 = vst [vmem:[%s483_s2 + $0x8] sm:$0xff] (%p129_p10), %v350_v0 }
  0x20   : > { %137 = vst [vmem:[%s483_s2 + $0x10] sm:$0xff] (%p129_p10), %v350_v0  ;;  %138 = vst [vmem:[%s483_s2 + $0x18] sm:$0xff] (%p129_p10), %v350_v0 }
  0x21   : > { %139 = vst [vmem:[%s483_s2 + $0x20] sm:$0xff] (%p129_p10), %v350_v0  ;;  %140 = vst [vmem:[%s483_s2 + $0x28] sm:$0xff] (%p129_p10), %v350_v0 }
  0x22   : > { %141 = vst [vmem:[%s483_s2 + $0x30] sm:$0xff] (%p129_p10), %v350_v0  ;;  %142 = vst [vmem:[%s483_s2 + $0x38] sm:$0xff] (%p129_p10), %v350_v0 }
  0x24 PF: > { %s144_s9 = sld [smem:[#allocation3]]  ;;  %s260_s10 = sld [smem:[#allocation3 + $0x1]]  ;;  %v143_v1 = vld [vmem:[%s128_s20] sm:$0xff]  ;;  %v351_v8 = vmov 0.0  }
  0x25   : > { %s263_s11 = sld [smem:[#allocation3 + $0x2]]  ;;  %s266_s12 = sld [smem:[#allocation3 + $0x3]] }
  0x26   : > { %s269_s13 = sld [smem:[#allocation3 + $0x4]]  ;;  %s415_s14 = sld [smem:[#allocation3 + $0x5]]  ;;  %v145_v2 = vld [vmem:[%s483_s2] sm:$0xff]  ;;  %v261_v4 = vld [vmem:[%s483_s2 + $0x8] sm:$0xff] }
  0x27   : > { %s417_s17 = sld [smem:[#allocation3 + $0x6]]  ;;  %s419_s18 = sld [smem:[#allocation3 + $0x7]]  ;;  %v264_v6 = vld [vmem:[%s483_s2 + $0x10] sm:$0xff]  ;;  %v267_v10 = vld [vmem:[%s483_s2 + $0x18] sm:$0xff] }
  0x28   : > { %v270_v18 = vld [vmem:[%s483_s2 + $0x20] sm:$0xff]  ;;  %v273_v21 = vld [vmem:[%s483_s2 + $0x28] sm:$0xff] }
  0x29   : > { %v276_v23 = vld [vmem:[%s483_s2 + $0x30] sm:$0xff]  ;;  %v279_v26 = vld [vmem:[%s483_s2 + $0x38] sm:$0xff] }
  0x2a   : > { %v146_v3 = vstv %s144_s9  ;;  %v155_v5 = vstv %s260_s10 }
  0x2b   : > { %vm147_vm0 = vcmp.gt.f32.partialorder %v143_v1, %v146_v3  ;;  %v164_v7 = vstv %s263_s11  ;;  %vm156_vm1 = vcmp.gt.f32.partialorder %v143_v1, %v155_v5  ;;  %v173_v11 = vstv %s266_s12 }
  0x2c   : > { %v148_v9 = vsel %vm147_vm0, 1.0, %v351_v8  ;;  %vm165_vm2 = vcmp.gt.f32.partialorder %v143_v1, %v164_v7  ;;  %v157_v13 = vsel %vm156_vm1, 1.0, %v351_v8  ;;  %vm174_vm3 = vcmp.gt.f32.partialorder %v143_v1, %v173_v11 }
  0x2d   : > { %v150_v12 = vadd.f32 %v148_v9, %v145_v2  ;;  %v166_v14 = vsel %vm165_vm2, 1.0, %v351_v8  ;;  %v159_v15 = vadd.f32 %v261_v4, %v157_v13  ;;  %v175_v17 = vsel %vm174_vm3, 1.0, %v351_v8 }
  0x2e   : > { %v168_v16 = vadd.f32 %v264_v6, %v166_v14  ;;  %v182_v19 = vstv %s269_s13  ;;  %v177_v20 = vadd.f32 %v267_v10, %v175_v17  ;;  %v191_v22 = vstv %s415_s14 }
  0x2f   : > { %151 = vst [vmem:[%s483_s2] sm:$0xff] %v150_v12  ;;  %vm183_vm4 = vcmp.gt.f32.partialorder %v143_v1, %v182_v19  ;;  %v200_v24 = vstv %s417_s17  ;;  %262 = vst [vmem:[%s483_s2 + $0x8] sm:$0xff] %v159_v15  ;;  %vm192_vm5 = vcmp.gt.f32.partialorder %v143_v1, %v191_v22  ;;  %v209_v27 = vstv %s419_s18 }
  0x30   : > { %265 = vst [vmem:[%s483_s2 + $0x10] sm:$0xff] %v168_v16  ;;  %v184_v25 = vsel %vm183_vm4, 1.0, %v351_v8  ;;  %vm201_vm6 = vcmp.gt.f32.partialorder %v143_v1, %v200_v24  ;;  %268 = vst [vmem:[%s483_s2 + $0x18] sm:$0xff] %v177_v20  ;;  %v193_v29 = vsel %vm192_vm5, 1.0, %v351_v8  ;;  %vm210_vm7 = vcmp.gt.f32.partialorder %v143_v1, %v209_v27 }
  0x31   : > { %v186_v28 = vadd.f32 %v270_v18, %v184_v25  ;;  %v202_v30 = vsel %vm201_vm6, 1.0, %v351_v8  ;;  %v195_v31 = vadd.f32 %v273_v21, %v193_v29  ;;  %v211_v33 = vsel %vm210_vm7, 1.0, %v351_v8 }
  0x32   : > { %v204_v32 = vadd.f32 %v276_v23, %v202_v30  ;;  %v213_v34 = vadd.f32 %v279_v26, %v211_v33 }
  0x33   : > { %271 = vst [vmem:[%s483_s2 + $0x20] sm:$0xff] %v186_v28  ;;  %274 = vst [vmem:[%s483_s2 + $0x28] sm:$0xff] %v195_v31 }
  0x34   : > { %277 = vst [vmem:[%s483_s2 + $0x30] sm:$0xff] %v204_v32  ;;  %280 = vst [vmem:[%s483_s2 + $0x38] sm:$0xff] %v213_v34 }
  0x35 PF: > { %s18_s16 = sadd.s32 1, %s347_s16   ;;  %s484_s14 = smov %s343_s15 }
  0x36   : > { %p15_p11 = scmp.ge.s32.totalorder %s18_s16, 4   ;;  %s485_s15 = smov %s487_s0 }
  0x38   :  { %17 = sbr.rel (!%p15_p11) target bundleno = 17 (0x11), region = 61 }

</bundles_post_ra>
